<compile_context>
chip_gen: v5e
topology: v5e:2x2
jax: 0.10.0
libtpu: 0.0.40
codegen_flags: <defaults>
</compile_context>

<pallas_src>
import functools
import math

import jax
import jax.numpy as jnp
from jax.experimental import pallas as pl
from jax.experimental.pallas import tpu as pltpu

LANE = 128                       # TPU lane width: feature dims padded to multiples of this
SUBLANE = 8                      # sublane granularity for the batch (M) tile
MAX_TM = 2048                    # batch-tile upper bound (review: sweep 1024-2048)
MIN_SPLIT_ROWS = 512             # batches >= this get >= 2 grid steps (v7x megacore)
VMEM_IO_BUDGET = 36 * 1024 * 1024   # cap on double-buffered x/out tiles (fits v7x's 64 MiB)
VMEM_LIMIT_CAP = 48 * 1024 * 1024   # never ask for more scoped VMEM than this


def _round_up(x, m):
    return (x + m - 1) // m * m


def _cdiv(a, b):
    return (a + b - 1) // b


def _choose_tile(B, dim_in_pad, out_pad, x_itemsize):
    """Pick (tm, n_blocks): large tiles, small batch-padding waste, >=2 steps for big batches."""
    n_blocks = max(_cdiv(B, MAX_TM), 2 if B >= MIN_SPLIT_ROWS else 1)
    tm = _round_up(_cdiv(B, n_blocks), SUBLANE)
    # Cap the double-buffered x/out tile footprint so it fits every generation's VMEM.
    per_row = 2 * (dim_in_pad * x_itemsize + out_pad * 4)
    tm_cap = max(SUBLANE, (VMEM_IO_BUDGET // per_row) // SUBLANE * SUBLANE)
    if tm > tm_cap:
        tm = tm_cap
        n_blocks = _cdiv(B, tm)
    return tm, n_blocks


def mlp_kernel(x_ref,
               w0_ref, b0_ref,
               w1_ref, b1_ref,
               w2_ref, b2_ref,
               w3_ref, b3_ref,
               o_ref):
    # Cast x to bf16 on-chip (avoids a host-side HBM pass over x); f32 MXU accumulation.
    x = x_ref[...].astype(jnp.bfloat16)
    # layer_input + ReLU
    h = jnp.dot(x, w0_ref[...], preferred_element_type=jnp.float32) + b0_ref[...]
    h = jnp.maximum(h, 0.0)
    # layer_hidden_0 + ReLU
    h = jnp.dot(h.astype(jnp.bfloat16), w1_ref[...],
                preferred_element_type=jnp.float32) + b1_ref[...]
    h = jnp.maximum(h, 0.0)
    # layer_hidden_1 + ReLU
    h = jnp.dot(h.astype(jnp.bfloat16), w2_ref[...],
                preferred_element_type=jnp.float32) + b2_ref[...]
    h = jnp.maximum(h, 0.0)
    # layer_hidden_2 (no activation; Dropout/LogSoftmax unused in the torch forward)
    o_ref[...] = (jnp.dot(h.astype(jnp.bfloat16), w3_ref[...],
                          preferred_element_type=jnp.float32) + b3_ref[...]).astype(o_ref.dtype)


def prepare_params(params):
    """Zero-pad every feature dim to 128 lanes and cast weights to bf16.

    Call ONCE outside the forward path and reuse the result across calls (the padding /
    cast used to run on every forward, which was pure launch + HBM overhead).
    Padded weight rows/cols and padded bias lanes are exact zeros, so padded lanes stay
    zero through bias+ReLU and the result is unchanged.
    """
    padded = []
    cur_in = params[0][0].shape[0]
    cur_in_pad = _round_up(cur_in, LANE)
    for w, b in params:
        o_dim = w.shape[1]
        o_pad = _round_up(o_dim, LANE)
        wp = jnp.zeros((cur_in_pad, o_pad), jnp.float32).at[:cur_in, :o_dim].set(w)
        bp = jnp.zeros((1, o_pad), jnp.float32).at[0, :o_dim].set(jnp.reshape(b, (-1,)))
        padded.append((wp.astype(jnp.bfloat16), bp))  # weights bf16, bias stays f32
        cur_in, cur_in_pad = o_dim, o_pad
    return tuple(padded)


@functools.partial(jax.jit, static_argnames=("dim_out",))
def mlp_forward(x_nchw, padded_params, *, dim_out):
    """x_nchw: (B, C, H, W). padded_params: output of prepare_params. Returns (B, dim_out) f32."""
    B = x_nchw.shape[0]
    dim_in = math.prod(x_nchw.shape[1:])          # torch: x.view(-1, C*H*W)
    x = x_nchw.reshape(B, dim_in)

    dim_in_pad = padded_params[0][0].shape[0]
    out_pad = padded_params[-1][0].shape[1]

    tm, n_blocks = _choose_tile(B, dim_in_pad, out_pad, x.dtype.itemsize)
    b_pad = tm * n_blocks

    # Pad only when actually needed (batch tail to a sublane multiple / feature dim to 128
    # lanes). When B is tile-aligned and dim_in is already a multiple of 128 this is a no-op,
    # so the dominant tensor is not rewritten to HBM before the kernel.
    if b_pad != B or dim_in_pad != dim_in:
        x = jnp.zeros((b_pad, dim_in_pad), x.dtype).at[:B, :dim_in].set(x)

    flat_args = [x]
    in_specs = [pl.BlockSpec((tm, dim_in_pad), lambda i: (i, 0))]
    for wp, bp in padded_params:
        flat_args.extend([wp, bp])
        in_specs.append(pl.BlockSpec(wp.shape, lambda i: (0, 0)))   # VMEM-resident weight
        in_specs.append(pl.BlockSpec(bp.shape, lambda i: (0, 0)))   # VMEM-resident bias

    # VMEM limit sized from the actual footprint: double-buffered x/out tiles + weights +
    # on-chip cast/activation scratch + margin; capped for the 64 MiB v7x part.
    io_bytes = 2 * tm * dim_in_pad * x.dtype.itemsize + 2 * tm * out_pad * 4
    w_bytes = 2 * sum(wp.size * wp.dtype.itemsize + bp.size * bp.dtype.itemsize
                      for wp, bp in padded_params)
    scratch_bytes = tm * dim_in_pad * 2 + 4 * tm * out_pad * 4
    vmem_limit = int(min(VMEM_LIMIT_CAP,
                         max(16 * 1024 * 1024,
                             io_bytes + w_bytes + scratch_bytes + 8 * 1024 * 1024)))

    # Advisory cost estimate for XLA scheduling around the custom call.
    flops = 2 * b_pad * sum(wp.shape[0] * wp.shape[1] for wp, _ in padded_params)
    bytes_accessed = int(x.size * x.dtype.itemsize + b_pad * out_pad * 4
                         + sum(wp.size * 2 + bp.size * 4 for wp, bp in padded_params))

    out = pl.pallas_call(
        mlp_kernel,
        out_shape=jax.ShapeDtypeStruct((b_pad, out_pad), jnp.float32),
        grid=(n_blocks,),
        in_specs=in_specs,
        out_specs=pl.BlockSpec((tm, out_pad), lambda i: (i, 0)),
        compiler_params=pltpu.CompilerParams(
            dimension_semantics=("parallel",),   # megacore sharding of batch tiles on v7x
            vmem_limit_bytes=vmem_limit,
        ),
        cost_estimate=pl.CostEstimate(flops=flops, transcendentals=0,
                                      bytes_accessed=bytes_accessed),
    )(*flat_args)

    return out[:B, :dim_out]


def init_params(key, dim_in, dim_hidden, dim_out):
    """Deterministic init. Weights stored (in, out) == torch.nn.Linear.weight.T"""
    dims = [dim_in] + list(dim_hidden) + [dim_out]
    params = []
    for i in range(len(dims) - 1):
        key, kw, kb = jax.random.split(key, 3)
        bound = 1.0 / math.sqrt(dims[i])
        w = jax.random.uniform(kw, (dims[i], dims[i + 1]), jnp.float32, -bound, bound)
        b = jax.random.uniform(kb, (1, dims[i + 1]), jnp.float32, -bound, bound)
        params.append((w, b))
    return params


if __name__ == "__main__":
    key = jax.random.PRNGKey(0)
    kx, kp = jax.random.split(key)

    # Small shapes consistent with the module: NCHW image flattened to dim_in.
    B, C, H, W = 2, 4, 16, 16
    dim_in = C * H * W          # 1024
    dim_hidden = [32, 32, 32]
    dim_out = 10

    x = jax.random.normal(kx, (B, C, H, W), jnp.float32)
    params = init_params(kp, dim_in, dim_hidden, dim_out)

    # Pad / cast weights ONCE (outside the per-call path), then run the fused kernel.
    prepared = prepare_params(params)
    out = mlp_forward(x, prepared, dim_out=dim_out)
    out = jax.block_until_ready(out)

    # Reference: true f32 module semantics. The kernel uses bf16 matmul operands with f32
    # accumulation (documented precision decision), so allow ~2e-2 abs/rel error.
    ref = x.reshape(B, -1)
    for i, (w, b) in enumerate(params):
        ref = ref @ w + b
        if i < len(params) - 1:
            ref = jnp.maximum(ref, 0.0)

    assert out.shape == (B, dim_out)
    max_err = jnp.max(jnp.abs(out - ref))
    assert jnp.allclose(out, ref, atol=2e-2, rtol=2e-2), f"max abs err {max_err}"

    print("KERNEL_OK")
</pallas_src>

<mosaic_0001>
module attributes {stable_mosaic.version = 11 : i64} {
  func.func @mlp_kernel(%arg0: i32, %arg1: memref<8x1024xf32, #tpu.memory_space<vmem>>, %arg2: memref<1024x128xbf16, #tpu.memory_space<vmem>>, %arg3: memref<1x128xf32, #tpu.memory_space<vmem>>, %arg4: memref<128x128xbf16, #tpu.memory_space<vmem>>, %arg5: memref<1x128xf32, #tpu.memory_space<vmem>>, %arg6: memref<128x128xbf16, #tpu.memory_space<vmem>>, %arg7: memref<1x128xf32, #tpu.memory_space<vmem>>, %arg8: memref<128x128xbf16, #tpu.memory_space<vmem>>, %arg9: memref<1x128xf32, #tpu.memory_space<vmem>>, %arg10: memref<8x128xf32, #tpu.memory_space<vmem>>) attributes {dimension_semantics = [#tpu.dimension_semantics<parallel>], iteration_bounds = array<i64: 1>, scalar_prefetch = 0 : i64, scratch_operands = 0 : i64, tpu.core_type = #tpu.core_type<tc>, window_params = [{transform_indices = @transform_0, window_bounds = array<i64: 8, 1024>}, {pipeline_mode = #tpu.pipeline_mode<synchronous>, transform_indices = @transform_1, window_bounds = array<i64: 1024, 128>}, {pipeline_mode = #tpu.pipeline_mode<synchronous>, transform_indices = @transform_2, window_bounds = array<i64: 1, 128>}, {pipeline_mode = #tpu.pipeline_mode<synchronous>, transform_indices = @transform_3, window_bounds = array<i64: 128, 128>}, {pipeline_mode = #tpu.pipeline_mode<synchronous>, transform_indices = @transform_4, window_bounds = array<i64: 1, 128>}, {pipeline_mode = #tpu.pipeline_mode<synchronous>, transform_indices = @transform_5, window_bounds = array<i64: 128, 128>}, {pipeline_mode = #tpu.pipeline_mode<synchronous>, transform_indices = @transform_6, window_bounds = array<i64: 1, 128>}, {pipeline_mode = #tpu.pipeline_mode<synchronous>, transform_indices = @transform_7, window_bounds = array<i64: 128, 128>}, {pipeline_mode = #tpu.pipeline_mode<synchronous>, transform_indices = @transform_8, window_bounds = array<i64: 1, 128>}, {transform_indices = @transform_9, window_bounds = array<i64: 8, 128>}]} {
    %c0 = arith.constant 0 : index
    %c0_0 = arith.constant 0 : index
    %0 = vector.load %arg1[%c0, %c0_0] : memref<8x1024xf32, #tpu.memory_space<vmem>>, vector<8x1024xf32>
    %1 = arith.truncf %0 : vector<8x1024xf32> to vector<8x1024xbf16>
    %c0_1 = arith.constant 0 : index
    %c0_2 = arith.constant 0 : index
    %2 = vector.load %arg2[%c0_1, %c0_2] : memref<1024x128xbf16, #tpu.memory_space<vmem>>, vector<1024x128xbf16>
    %cst = arith.constant dense<0.000000e+00> : vector<8x128xf32>
    %3 = tpu.matmul %1, %2, %cst {dimension_numbers = #tpu.dot_dimension_numbers<[1], [0], [0], [1], [0, 0, 1, 1], [], []>} : vector<8x1024xbf16>, vector<1024x128xbf16>, vector<8x128xf32> -> vector<8x128xf32>
    %c0_3 = arith.constant 0 : index
    %c0_4 = arith.constant 0 : index
    %4 = vector.load %arg3[%c0_3, %c0_4] : memref<1x128xf32, #tpu.memory_space<vmem>>, vector<1x128xf32>
    %5 = vector.broadcast %4 : vector<1x128xf32> to vector<8x128xf32>
    %6 = arith.addf %3, %5 : vector<8x128xf32>
    %cst_5 = arith.constant 0.000000e+00 : f32
    %7 = vector.broadcast %cst_5 : f32 to vector<8x128xf32>
    %8 = arith.maximumf %6, %7 : vector<8x128xf32>
    %9 = arith.truncf %8 : vector<8x128xf32> to vector<8x128xbf16>
    %c0_6 = arith.constant 0 : index
    %c0_7 = arith.constant 0 : index
    %10 = vector.load %arg4[%c0_6, %c0_7] : memref<128x128xbf16, #tpu.memory_space<vmem>>, vector<128x128xbf16>
    %cst_8 = arith.constant dense<0.000000e+00> : vector<8x128xf32>
    %11 = tpu.matmul %9, %10, %cst_8 {dimension_numbers = #tpu.dot_dimension_numbers<[1], [0], [0], [1], [0, 0, 1, 1], [], []>} : vector<8x128xbf16>, vector<128x128xbf16>, vector<8x128xf32> -> vector<8x128xf32>
    %c0_9 = arith.constant 0 : index
    %c0_10 = arith.constant 0 : index
    %12 = vector.load %arg5[%c0_9, %c0_10] : memref<1x128xf32, #tpu.memory_space<vmem>>, vector<1x128xf32>
    %13 = vector.broadcast %12 : vector<1x128xf32> to vector<8x128xf32>
    %14 = arith.addf %11, %13 : vector<8x128xf32>
    %cst_11 = arith.constant 0.000000e+00 : f32
    %15 = vector.broadcast %cst_11 : f32 to vector<8x128xf32>
    %16 = arith.maximumf %14, %15 : vector<8x128xf32>
    %17 = arith.truncf %16 : vector<8x128xf32> to vector<8x128xbf16>
    %c0_12 = arith.constant 0 : index
    %c0_13 = arith.constant 0 : index
    %18 = vector.load %arg6[%c0_12, %c0_13] : memref<128x128xbf16, #tpu.memory_space<vmem>>, vector<128x128xbf16>
    %cst_14 = arith.constant dense<0.000000e+00> : vector<8x128xf32>
    %19 = tpu.matmul %17, %18, %cst_14 {dimension_numbers = #tpu.dot_dimension_numbers<[1], [0], [0], [1], [0, 0, 1, 1], [], []>} : vector<8x128xbf16>, vector<128x128xbf16>, vector<8x128xf32> -> vector<8x128xf32>
    %c0_15 = arith.constant 0 : index
    %c0_16 = arith.constant 0 : index
    %20 = vector.load %arg7[%c0_15, %c0_16] : memref<1x128xf32, #tpu.memory_space<vmem>>, vector<1x128xf32>
    %21 = vector.broadcast %20 : vector<1x128xf32> to vector<8x128xf32>
    %22 = arith.addf %19, %21 : vector<8x128xf32>
    %cst_17 = arith.constant 0.000000e+00 : f32
    %23 = vector.broadcast %cst_17 : f32 to vector<8x128xf32>
    %24 = arith.maximumf %22, %23 : vector<8x128xf32>
    %25 = arith.truncf %24 : vector<8x128xf32> to vector<8x128xbf16>
    %c0_18 = arith.constant 0 : index
    %c0_19 = arith.constant 0 : index
    %26 = vector.load %arg8[%c0_18, %c0_19] : memref<128x128xbf16, #tpu.memory_space<vmem>>, vector<128x128xbf16>
    %cst_20 = arith.constant dense<0.000000e+00> : vector<8x128xf32>
    %27 = tpu.matmul %25, %26, %cst_20 {dimension_numbers = #tpu.dot_dimension_numbers<[1], [0], [0], [1], [0, 0, 1, 1], [], []>} : vector<8x128xbf16>, vector<128x128xbf16>, vector<8x128xf32> -> vector<8x128xf32>
    %c0_21 = arith.constant 0 : index
    %c0_22 = arith.constant 0 : index
    %28 = vector.load %arg9[%c0_21, %c0_22] : memref<1x128xf32, #tpu.memory_space<vmem>>, vector<1x128xf32>
    %29 = vector.broadcast %28 : vector<1x128xf32> to vector<8x128xf32>
    %30 = arith.addf %27, %29 : vector<8x128xf32>
    %c0_23 = arith.constant 0 : index
    %c0_24 = arith.constant 0 : index
    %31 = vector.load %arg10[%c0_23, %c0_24] : memref<8x128xf32, #tpu.memory_space<vmem>>, vector<8x128xf32>
    tpu.vector_store %arg10[%c0_23, %c0_24], %30 {strides = array<i32>} : memref<8x128xf32, #tpu.memory_space<vmem>>, vector<8x128xf32>,
    return
  }
  func.func @transform_0(%arg0: i32) -> (i32, i32) {
    %c0_i32 = arith.constant 0 : i32
    %c0_i32_0 = arith.constant 0 : i32
    return %arg0, %c0_i32 : i32, i32
  }
  func.func @transform_1(%arg0: i32) -> (i32, i32) {
    %c0_i32 = arith.constant 0 : i32
    %c0_i32_0 = arith.constant 0 : i32
    %c0_i32_1 = arith.constant 0 : i32
    return %c0_i32, %c0_i32_0 : i32, i32
  }
  func.func @transform_2(%arg0: i32) -> (i32, i32) {
    %c0_i32 = arith.constant 0 : i32
    %c0_i32_0 = arith.constant 0 : i32
    %c0_i32_1 = arith.constant 0 : i32
    return %c0_i32, %c0_i32_0 : i32, i32
  }
  func.func @transform_3(%arg0: i32) -> (i32, i32) {
    %c0_i32 = arith.constant 0 : i32
    %c0_i32_0 = arith.constant 0 : i32
    %c0_i32_1 = arith.constant 0 : i32
    return %c0_i32, %c0_i32_0 : i32, i32
  }
  func.func @transform_4(%arg0: i32) -> (i32, i32) {
    %c0_i32 = arith.constant 0 : i32
    %c0_i32_0 = arith.constant 0 : i32
    %c0_i32_1 = arith.constant 0 : i32
    return %c0_i32, %c0_i32_0 : i32, i32
  }
  func.func @transform_5(%arg0: i32) -> (i32, i32) {
    %c0_i32 = arith.constant 0 : i32
    %c0_i32_0 = arith.constant 0 : i32
    %c0_i32_1 = arith.constant 0 : i32
    return %c0_i32, %c0_i32_0 : i32, i32
  }
  func.func @transform_6(%arg0: i32) -> (i32, i32) {
    %c0_i32 = arith.constant 0 : i32
    %c0_i32_0 = arith.constant 0 : i32
    %c0_i32_1 = arith.constant 0 : i32
    return %c0_i32, %c0_i32_0 : i32, i32
  }
  func.func @transform_7(%arg0: i32) -> (i32, i32) {
    %c0_i32 = arith.constant 0 : i32
    %c0_i32_0 = arith.constant 0 : i32
    %c0_i32_1 = arith.constant 0 : i32
    return %c0_i32, %c0_i32_0 : i32, i32
  }
  func.func @transform_8(%arg0: i32) -> (i32, i32) {
    %c0_i32 = arith.constant 0 : i32
    %c0_i32_0 = arith.constant 0 : i32
    %c0_i32_1 = arith.constant 0 : i32
    return %c0_i32, %c0_i32_0 : i32, i32
  }
  func.func @transform_9(%arg0: i32) -> (i32, i32) {
    %c0_i32 = arith.constant 0 : i32
    %c0_i32_0 = arith.constant 0 : i32
    return %arg0, %c0_i32 : i32, i32
  }
}

</mosaic_0001>

<bundles_post_ra>
// kernel: mlp_forward.1
= control target key start
LH: loop header
LB: loop body
LE: loop exit
PB: predicated region body
PF: predicated region fallthrough
CT: control target
= control target key end

     0   :  { %14 = vsyncpa [#allocation3], 0  ;;  %s1412_s12 = smov [#allocation2]   ;;  %s1413_s14 = smov 64   ;;  %s1579_s0 = inlined_call_operand.vmem [shape: f32[8,1024], index: 0, kind: input, shape index: {}]   ;;  %s1580_s1 = inlined_call_operand.hbm [shape: bf16[1024,128], index: 1, kind: input, shape index: {}]   ;;  %s1581_s2 = inlined_call_operand.vmem [shape: f32[1,128], index: 2, kind: input, shape index: {}]   ;;  %s1582_s3 = inlined_call_operand.vmem [shape: bf16[128,128], index: 3, kind: input, shape index: {}]   ;;  %s1583_s4 = inlined_call_operand.vmem [shape: f32[1,128], index: 4, kind: input, shape index: {}]   ;;  %s1584_s5 = inlined_call_operand.vmem [shape: bf16[128,128], index: 5, kind: input, shape index: {}]   ;;  %s1585_s6 = inlined_call_operand.vmem [shape: f32[1,128], index: 6, kind: input, shape index: {}]   ;;  %s1586_s7 = inlined_call_operand.vmem [shape: bf16[128,128], index: 7, kind: input, shape index: {}]   ;;  %s1587_s8 = inlined_call_operand.vmem [shape: f32[1,128], index: 8, kind: input, shape index: {}]   ;;  %s1588_s9 = inlined_call_operand.vmem [shape: f32[8,128], index: 9, kind: output, shape index: {}]  }
   0x1   :  { %s21_s11 = sshll.u32 %s1580_s1, 4  ;;  %s23_s13 = sshll.u32 %s1412_s12, 4  ;;  %s22_s11 = int_to_ptr.hbm [resolvable:$true] %s21_s11  ;;  %s24_s13 = int_to_ptr.vmem [resolvable:$true] %s23_s13 }
   0x2   :  { %s1414_s15 = smov 4  }
   0x3   :  { %29 = dma.hbm_to_vmem [thread:$0]  %s22_s11, 8192, %s24_s13, [#allocation3], %s1413_s14, %s1413_s14, %s1414_s15  }
   0x4   :  { %1410 = dma.done.wait [#allocation3], 8192  }
   0x5   :  { %1411 = vsyncadd [#allocation3], 4294959104  ;;  %v1298_v0 = vld [vmem:[#allocation2 + $0x38] sm:$0xff]  ;;  %v1297_v4 = vld [vmem:[#allocation2 + $0x30] sm:$0xff] }
   0x6   :  { %v1306_v1 = vld [vmem:[#allocation2 + $0x78] sm:$0xff]  ;;  %580 = vmatpush.bf16.msra.mxu0 %v1298_v0  ;;  %v1305_v5 = vld [vmem:[#allocation2 + $0x70] sm:$0xff]  ;;  %v1296_v8 = vld [vmem:[#allocation2 + $0x28] sm:$0xff] }
   0x7   :  { %v1314_v2 = vld [vmem:[#allocation2 + $0xb8] sm:$0xff]  ;;  %593 = vmatpush.bf16.msra.mxu1 %v1306_v1  ;;  %v1313_v6 = vld [vmem:[#allocation2 + $0xb0] sm:$0xff]  ;;  %v1304_v9 = vld [vmem:[#allocation2 + $0x68] sm:$0xff] }
   0x8   :  { %v1322_v3 = vld [vmem:[#allocation2 + $0xf8] sm:$0xff]  ;;  %606 = vmatpush.bf16.msra.mxu2 %v1314_v2  ;;  %v1321_v7 = vld [vmem:[#allocation2 + $0xf0] sm:$0xff]  ;;  %v1312_v10 = vld [vmem:[#allocation2 + $0xa8] sm:$0xff] }
   0x9   :  { %619 = vmatpush.bf16.msra.mxu3 %v1322_v3  ;;  %v1320_v11 = vld [vmem:[#allocation2 + $0xe8] sm:$0xff]  ;;  %v1295_v12 = vld [vmem:[#allocation2 + $0x20] sm:$0xff]  ;;  %v1294_v16 = vld [vmem:[#allocation2 + $0x18] sm:$0xff] }
   0xa   :  { %581 = vmatpush.bf16.msra.mxu0 %v1297_v4  ;;  %v1303_v13 = vld [vmem:[#allocation2 + $0x60] sm:$0xff]  ;;  %v1302_v17 = vld [vmem:[#allocation2 + $0x58] sm:$0xff]  ;;  %v1293_v20 = vld [vmem:[#allocation2 + $0x10] sm:$0xff] }
   0xb   :  { %594 = vmatpush.bf16.msra.mxu1 %v1305_v5  ;;  %v1311_v14 = vld [vmem:[#allocation2 + $0xa0] sm:$0xff]  ;;  %v1310_v18 = vld [vmem:[#allocation2 + $0x98] sm:$0xff]  ;;  %v1301_v21 = vld [vmem:[#allocation2 + $0x50] sm:$0xff] }
   0xc   :  { %607 = vmatpush.bf16.msra.mxu2 %v1313_v6  ;;  %v1319_v15 = vld [vmem:[#allocation2 + $0xe0] sm:$0xff]  ;;  %v1318_v19 = vld [vmem:[#allocation2 + $0xd8] sm:$0xff]  ;;  %v1309_v22 = vld [vmem:[#allocation2 + $0x90] sm:$0xff] }
   0xd   :  { %620 = vmatpush.bf16.msra.mxu3 %v1321_v7  ;;  %v1317_v23 = vld [vmem:[#allocation2 + $0xd0] sm:$0xff]  ;;  %v1292_v24 = vld [vmem:[#allocation2 + $0x8] sm:$0xff]  ;;  %v1291_v28 = vld [vmem:[#allocation2] sm:$0xff] }
   0xe   :  { %582 = vmatpush.bf16.msra.mxu0 %v1296_v8  ;;  %v1300_v25 = vld [vmem:[#allocation2 + $0x48] sm:$0xff]  ;;  %v1299_v29 = vld [vmem:[#allocation2 + $0x40] sm:$0xff]  ;;  %v1330_v32 = vld [vmem:[#allocation2 + $0x138] sm:$0xff] }
   0xf   :  { %595 = vmatpush.bf16.msra.mxu1 %v1304_v9  ;;  %v1308_v26 = vld [vmem:[#allocation2 + $0x88] sm:$0xff]  ;;  %v1307_v30 = vld [vmem:[#allocation2 + $0x80] sm:$0xff]  ;;  %v50_v33 = vld [vmem:[%s1579_s0 + $0x10] sm:$0xff] }
  0x10   :  { %608 = vmatpush.bf16.msra.mxu2 %v1312_v10  ;;  %v1316_v27 = vld [vmem:[#allocation2 + $0xc8] sm:$0xff]  ;;  %v1315_v31 = vld [vmem:[#allocation2 + $0xc0] sm:$0xff]  ;;  %v1338_v35 = vld [vmem:[#allocation2 + $0x178] sm:$0xff]  ;;  %v58_v40 = vpack.c.bf16 %v50_v33, %v50_v33 }
  0x11   :  { %621 = vmatpush.bf16.msra.mxu3 %v1320_v11  ;;  %v48_v34 = vld [vmem:[%s1579_s0] sm:$0xff]  ;;  %v51_v36 = vld [vmem:[%s1579_s0 + $0x18] sm:$0xff]  ;;  %v49_v37 = vld [vmem:[%s1579_s0 + $0x8] sm:$0xff] }
  0x12   :  { %583 = vmatpush.bf16.msra.mxu0 %v1295_v12  ;;  %v1346_v38 = vld [vmem:[#allocation2 + $0x1b8] sm:$0xff]  ;;  %v56_v41 = vpack.c.bf16 %v48_v34, %v48_v34  ;;  %v59_v42 = vpack.c.bf16 %v51_v36, %v51_v36  ;;  %v57_v43 = vpack.c.bf16 %v49_v37, %v49_v37  ;;  %v1329_v44 = vld [vmem:[#allocation2 + $0x130] sm:$0xff]  ;;  %v1328_v48 = vld [vmem:[#allocation2 + $0x128] sm:$0xff] }
  0x13   :  { %596 = vmatpush.bf16.msra.mxu1 %v1303_v13  ;;  %v1354_v39 = vld [vmem:[#allocation2 + $0x1f8] sm:$0xff]  ;;  %v1337_v45 = vld [vmem:[#allocation2 + $0x170] sm:$0xff]  ;;  %v1336_v49 = vld [vmem:[#allocation2 + $0x168] sm:$0xff] }
  0x14   :  { %609 = vmatpush.bf16.msra.mxu2 %v1311_v14  ;;  %v1345_v46 = vld [vmem:[#allocation2 + $0x1b0] sm:$0xff]  ;;  %v1344_v50 = vld [vmem:[#allocation2 + $0x1a8] sm:$0xff]  ;;  %v1327_v52 = vld [vmem:[#allocation2 + $0x120] sm:$0xff] }
  0x15   :  { %622 = vmatpush.bf16.msra.mxu3 %v1319_v15  ;;  %v1353_v47 = vld [vmem:[#allocation2 + $0x1f0] sm:$0xff]  ;;  %v1352_v51 = vld [vmem:[#allocation2 + $0x1e8] sm:$0xff]  ;;  %v1335_v53 = vld [vmem:[#allocation2 + $0x160] sm:$0xff] }
  0x16   :  { %584 = vmatpush.bf16.msra.mxu0 %v1294_v16  ;;  %v1343_v54 = vld [vmem:[#allocation2 + $0x1a0] sm:$0xff]  ;;  %v1326_v56 = vld [vmem:[#allocation2 + $0x118] sm:$0xff]  ;;  %v1325_v60 = vld [vmem:[#allocation2 + $0x110] sm:$0xff] }
  0x17   :  { %597 = vmatpush.bf16.msra.mxu1 %v1302_v17  ;;  %v1351_v55 = vld [vmem:[#allocation2 + $0x1e0] sm:$0xff]  ;;  %v1334_v57 = vld [vmem:[#allocation2 + $0x158] sm:$0xff]  ;;  %v1333_v61 = vld [vmem:[#allocation2 + $0x150] sm:$0xff] }
  0x18   :  { %610 = vmatpush.bf16.msra.mxu2 %v1310_v18  ;;  %v1342_v58 = vld [vmem:[#allocation2 + $0x198] sm:$0xff]  ;;  %v1341_v62 = vld [vmem:[#allocation2 + $0x190] sm:$0xff]  ;;  %v1324_v0 = vld [vmem:[#allocation2 + $0x108] sm:$0xff] }
  0x19   :  { %623 = vmatpush.bf16.msra.mxu3 %v1318_v19  ;;  %v1350_v59 = vld [vmem:[#allocation2 + $0x1d8] sm:$0xff]  ;;  %v1349_v63 = vld [vmem:[#allocation2 + $0x1d0] sm:$0xff]  ;;  %v1332_v1 = vld [vmem:[#allocation2 + $0x148] sm:$0xff] }
  0x1a   :  { %585 = vmatpush.bf16.msra.mxu0 %v1293_v20  ;;  %v1340_v2 = vld [vmem:[#allocation2 + $0x188] sm:$0xff]  ;;  %v1323_v4 = vld [vmem:[#allocation2 + $0x100] sm:$0xff]  ;;  %v54_v10 = vld [vmem:[%s1579_s0 + $0x30] sm:$0xff] }
  0x1b   :  { %598 = vmatpush.bf16.msra.mxu1 %v1301_v21  ;;  %v1348_v3 = vld [vmem:[#allocation2 + $0x1c8] sm:$0xff]  ;;  %v1331_v5 = vld [vmem:[#allocation2 + $0x140] sm:$0xff]  ;;  %v55_v11 = vld [vmem:[%s1579_s0 + $0x38] sm:$0xff]  ;;  %v62_v14 = vpack.c.bf16 %v54_v10, %v54_v10 }
  0x1c   :  { %611 = vmatpush.bf16.msra.mxu2 %v1309_v22  ;;  %v1339_v6 = vld [vmem:[#allocation2 + $0x180] sm:$0xff]  ;;  %v53_v8 = vld [vmem:[%s1579_s0 + $0x28] sm:$0xff]  ;;  %v63_v15 = vpack.c.bf16 %v55_v11, %v55_v11  ;;  %v1362_v16 = vld [vmem:[%s1582_s3 + $0x38] sm:$0xff] }
  0x1d   :  { %624 = vmatpush.bf16.msra.mxu3 %v1317_v23  ;;  %v52_v7 = vld [vmem:[%s1579_s0 + $0x20] sm:$0xff]  ;;  %v61_v13 = vpack.c.bf16 %v53_v8, %v53_v8  ;;  %v1361_v17 = vld [vmem:[%s1582_s3 + $0x30] sm:$0xff]  ;;  %v1360_v18 = vld [vmem:[%s1582_s3 + $0x28] sm:$0xff] }
  0x1e   :  { %586 = vmatpush.bf16.msra.mxu0 %v1292_v24  ;;  %v1347_v9 = vld [vmem:[#allocation2 + $0x1c0] sm:$0xff]  ;;  %v60_v12 = vpack.c.bf16 %v52_v7, %v52_v7  ;;  %v1358_v20 = vld [vmem:[%s1582_s3 + $0x18] sm:$0xff]  ;;  %v1357_v22 = vld [vmem:[%s1582_s3 + $0x10] sm:$0xff] }
  0x1f   :  { %599 = vmatpush.bf16.msra.mxu1 %v1300_v25  ;;  %v1359_v19 = vld [vmem:[%s1582_s3 + $0x20] sm:$0xff]  ;;  %v1356_v24 = vld [vmem:[%s1582_s3 + $0x8] sm:$0xff]  ;;  %v1369_v34 = vld [vmem:[%s1584_s5 + $0x30] sm:$0xff] }
  0x20   :  { %612 = vmatpush.bf16.msra.mxu2 %v1308_v26  ;;  %v1368_v36 = vld [vmem:[%s1584_s5 + $0x28] sm:$0xff]  ;;  %v1371_v8 = vld [vmem:[%s1586_s7] sm:$0xff] }
  0x21   :  { %625 = vmatpush.bf16.msra.mxu3 %v1316_v27  ;;  %v1372_v7 = vld [vmem:[%s1586_s7 + $0x8] sm:$0xff] }
  0x22   :  { %587 = vmatpush.bf16.msra.mxu0 %v1291_v28  ;;  %v1355_v28 = vld [vmem:[%s1582_s3] sm:$0xff] }
  0x23   :  { %600 = vmatpush.bf16.msra.mxu1 %v1299_v29 }
  0x24   :  { %613 = vmatpush.bf16.msra.mxu2 %v1307_v30  ;;  %v1382_v30 = vld [vmem:[%s1581_s2] ss:$0 sm:$0xff] }
  0x25   :  { %626 = vmatpush.bf16.msra.mxu3 %v1315_v31  ;;  %588 = vmatmul.bf16.vlgmr.msra.gmra.mxu0 %v56_v41  ;;  %v1370_v31 = vld [vmem:[%s1584_s5 + $0x38] sm:$0xff] }
  0x26   :  { %632 = vmatpush.bf16.msrb.mxu0 %v1330_v32  ;;  %601 = vmatmul.bf16.vlgmr.msra.gmra.mxu1 %v57_v43 }
  0x27   :  { %645 = vmatpush.bf16.msrb.mxu1 %v1338_v35  ;;  %614 = vmatmul.bf16.vlgmr.msra.gmra.mxu2 %v58_v40  ;;  %v1366_v40 = vld [vmem:[%s1584_s5 + $0x18] sm:$0xff] }
  0x28   :  { %658 = vmatpush.bf16.msrb.mxu2 %v1346_v38  ;;  %627 = vmatmul.bf16.vlgmr.msra.gmra.mxu3 %v59_v42  ;;  %v1367_v38 = vld [vmem:[%s1584_s5 + $0x20] sm:$0xff] }
  0x29   :  { %671 = vmatpush.bf16.msrb.mxu3 %v1354_v39 }
  0x2a   :  { %633 = vmatpush.bf16.msrb.mxu0 %v1329_v44 }
  0x2b   :  { %646 = vmatpush.bf16.msrb.mxu1 %v1337_v45  ;;  %v1365_v45 = vld [vmem:[%s1584_s5 + $0x10] sm:$0xff] }
  0x2c   :  { %659 = vmatpush.bf16.msrb.mxu2 %v1345_v46 }
  0x2d   :  { %672 = vmatpush.bf16.msrb.mxu3 %v1353_v47 }
  0x2e   :  { %634 = vmatpush.bf16.msrb.mxu0 %v1328_v48 }
  0x2f   :  { %647 = vmatpush.bf16.msrb.mxu1 %v1336_v49 }
  0x30   :  { %660 = vmatpush.bf16.msrb.mxu2 %v1344_v50 }
  0x31   :  { %673 = vmatpush.bf16.msrb.mxu3 %v1352_v51 }
  0x32   :  { %635 = vmatpush.bf16.msrb.mxu0 %v1327_v52 }
  0x33   :  { %648 = vmatpush.bf16.msrb.mxu1 %v1335_v53 }
  0x34   :  { %661 = vmatpush.bf16.msrb.mxu2 %v1343_v54 }
  0x35   :  { %674 = vmatpush.bf16.msrb.mxu3 %v1351_v55 }
  0x36   :  { %636 = vmatpush.bf16.msrb.mxu0 %v1326_v56 }
  0x37   :  { %649 = vmatpush.bf16.msrb.mxu1 %v1334_v57  ;;  %v1364_v57 = vld [vmem:[%s1584_s5 + $0x8] sm:$0xff] }
  0x38   :  { %662 = vmatpush.bf16.msrb.mxu2 %v1342_v58  ;;  %v1363_v58 = vld [vmem:[%s1584_s5] sm:$0xff] }
  0x39   :  { %675 = vmatpush.bf16.msrb.mxu3 %v1350_v59  ;;  %v1378_v59 = vld [vmem:[%s1586_s7 + $0x38] sm:$0xff] }
  0x3a   :  { %637 = vmatpush.bf16.msrb.mxu0 %v1325_v60  ;;  %v1377_v60 = vld [vmem:[%s1586_s7 + $0x30] sm:$0xff] }
  0x3b   :  { %650 = vmatpush.bf16.msrb.mxu1 %v1333_v61  ;;  %v1376_v61 = vld [vmem:[%s1586_s7 + $0x28] sm:$0xff] }
  0x3c   :  { %663 = vmatpush.bf16.msrb.mxu2 %v1341_v62  ;;  %v1375_v62 = vld [vmem:[%s1586_s7 + $0x20] sm:$0xff] }
  0x3d   :  { %676 = vmatpush.bf16.msrb.mxu3 %v1349_v63  ;;  %v1374_v63 = vld [vmem:[%s1586_s7 + $0x18] sm:$0xff] }
  0x3e   :  { %638 = vmatpush.bf16.msrb.mxu0 %v1324_v0  ;;  %v1373_v0 = vld [vmem:[%s1586_s7 + $0x10] sm:$0xff] }
  0x3f   :  { %651 = vmatpush.bf16.msrb.mxu1 %v1332_v1  ;;  %v1383_v1 = vld [vmem:[%s1583_s4] ss:$0 sm:$0xff] }
  0x40   :  { %664 = vmatpush.bf16.msrb.mxu2 %v1340_v2 }
  0x41   :  { %677 = vmatpush.bf16.msrb.mxu3 %v1348_v3 }
  0x42   :  { %639 = vmatpush.bf16.msrb.mxu0 %v1323_v4 }
  0x43   :  { %652 = vmatpush.bf16.msrb.mxu1 %v1331_v5 }
  0x44   :  { %665 = vmatpush.bf16.msrb.mxu2 %v1339_v6 }
  0x45   :  { %678 = vmatpush.bf16.msrb.mxu3 %v1347_v9  ;;  %640 = vmatmul.bf16.vlgmr.msrb.gmra.mxu0 %v60_v12  ;;  %v1384_v9 = vld [vmem:[%s1585_s6] ss:$0 sm:$0xff] }
  0x46   :  { %653 = vmatmul.bf16.vlgmr.msrb.gmra.mxu1 %v61_v13  ;;  %754 = vmatpush.bf16.msra.mxu0 %v1362_v16 }
  0x47   :  { %666 = vmatmul.bf16.vlgmr.msrb.gmra.mxu2 %v62_v14  ;;  %837 = vmatpush.bf16.msra.mxu1 %v1370_v31 }
  0x48   :  { %679 = vmatmul.bf16.vlgmr.msrb.gmra.mxu3 %v63_v15  ;;  %920 = vmatpush.bf16.msra.mxu2 %v1378_v59  ;;  %v1385_v15 = vld [vmem:[%s1587_s8] ss:$0 sm:$0xff] }
  0x4a   :  { %755 = vmatpush.bf16.msra.mxu0 %v1361_v17 }
  0x4b   :  { %838 = vmatpush.bf16.msra.mxu1 %v1369_v34 }
  0x4c   :  { %921 = vmatpush.bf16.msra.mxu2 %v1377_v60 }
  0x4e   :  { %756 = vmatpush.bf16.msra.mxu0 %v1360_v18 }
  0x4f   :  { %839 = vmatpush.bf16.msra.mxu1 %v1368_v36 }
  0x50   :  { %922 = vmatpush.bf16.msra.mxu2 %v1376_v61 }
  0x52   :  { %757 = vmatpush.bf16.msra.mxu0 %v1359_v19 }
  0x53   :  { %840 = vmatpush.bf16.msra.mxu1 %v1367_v38 }
  0x54   :  { %923 = vmatpush.bf16.msra.mxu2 %v1375_v62 }
  0x56   :  { %758 = vmatpush.bf16.msra.mxu0 %v1358_v20 }
  0x57   :  { %841 = vmatpush.bf16.msra.mxu1 %v1366_v40 }
  0x58   :  { %924 = vmatpush.bf16.msra.mxu2 %v1374_v63 }
  0x5a   :  { %759 = vmatpush.bf16.msra.mxu0 %v1357_v22 }
  0x5b   :  { %842 = vmatpush.bf16.msra.mxu1 %v1365_v45 }
  0x5c   :  { %925 = vmatpush.bf16.msra.mxu2 %v1373_v0 }
  0x5e   :  { %760 = vmatpush.bf16.msra.mxu0 %v1356_v24 }
  0x5f   :  { %843 = vmatpush.bf16.msra.mxu1 %v1364_v57 }
  0x60   :  { %926 = vmatpush.bf16.msra.mxu2 %v1372_v7 }
  0x62   :  { %761 = vmatpush.bf16.msra.mxu0 %v1355_v28 }
  0x63   :  { %844 = vmatpush.bf16.msra.mxu1 %v1363_v58 }
  0x64   :  { %927 = vmatpush.bf16.msra.mxu2 %v1371_v8 }
  0xa2   :  { %v589_v21 = vpop.f32.mrf.mxu0 }
  0xa3   :  { %v602_v23 = vpop.f32.mrf.mxu1  ;;  %v590_v35 = vadd.f32 %v1382_v30, %v589_v21 }
  0xa5   :  { %v603_v37 = vadd.f32 %v602_v23, %v590_v35 }
  0xaa   :  { %v615_v25 = vpop.f32.mrf.mxu2  ;;  %v591_v27 = vpop.f32.mrf.mxu0 }
  0xab   :  { %v628_v26 = vpop.f32.mrf.mxu3  ;;  %v604_v29 = vpop.f32.mrf.mxu1  ;;  %v616_v39 = vadd.f32 %v615_v25, %v603_v37 }
  0xad   :  { %v629_v41 = vadd.f32 %v628_v26, %v616_v39 }
  0xb2   :  { %v617_v32 = vpop.f32.mrf.mxu2 }
  0xb3   :  { %v630_v33 = vpop.f32.mrf.mxu3 }
  0xc2   :  { %v641_v42 = vpop.f32.mrf.mxu0 }
  0xc3   :  { %v654_v43 = vpop.f32.mrf.mxu1  ;;  %v642_v44 = vadd.f32 %v641_v42, %v629_v41 }
  0xc5   :  { %v655_v46 = vadd.f32 %v654_v43, %v642_v44 }
  0xca   :  { %v667_v47 = vpop.f32.mrf.mxu2  ;;  %v643_v50 = vpop.f32.mrf.mxu0 }
  0xcb   :  { %v680_v48 = vpop.f32.mrf.mxu3  ;;  %v668_v49 = vadd.f32 %v667_v47, %v655_v46  ;;  %v656_v51 = vpop.f32.mrf.mxu1 }
  0xcd   :  { %v681_v52 = vadd.f32 %v680_v48, %v668_v49 }
  0xcf   :  { %v684_v53 = vmax.f32 %v681_v52, 0.0 }
  0xd1   :  { %v685_v54 = vpack.c.bf16 %v684_v53, %v684_v53 }
  0xd2   :  { %v669_v55 = vpop.f32.mrf.mxu2 }
  0xd3   :  { %v682_v56 = vpop.f32.mrf.mxu3  ;;  %762 = vmatmul.bf16.vlgmr.msra.gmra.mxu0 %v685_v54 }
 0x150   :  { %v763_v2 = vpop.f32.mrf.mxu0 }
 0x151   :  { %v764_v3 = vadd.f32 %v1383_v1, %v763_v2 }
 0x153   :  { %v767_v4 = vmax.f32 %v764_v3, 0.0 }
 0x155   :  { %v768_v5 = vpack.c.bf16 %v767_v4, %v767_v4 }
 0x157   :  { %845 = vmatmul.bf16.vlgmr.msra.gmra.mxu1 %v768_v5 }
 0x158   :  { %v765_v6 = vpop.f32.mrf.mxu0 }
 0x1d4   :  { %v846_v10 = vpop.f32.mrf.mxu1 }
 0x1d5   :  { %v847_v11 = vadd.f32 %v1384_v9, %v846_v10 }
 0x1d7   :  { %v850_v12 = vmax.f32 %v847_v11, 0.0 }
 0x1d9   :  { %v851_v13 = vpack.c.bf16 %v850_v12, %v850_v12 }
 0x1db   :  { %928 = vmatmul.bf16.vlgmr.msra.gmra.mxu2 %v851_v13 }
 0x1dc   :  { %v848_v14 = vpop.f32.mrf.mxu1 }
 0x25e   :  { %v929_v16 = vpop.f32.mrf.mxu2 }
 0x25f   :  { %v930_v17 = vadd.f32 %v1385_v15, %v929_v16 }
 0x261   :  { %933 = vst [vmem:[%s1588_s9] sm:$0xff] %v930_v17 }
 0x266   :  { %v931_v18 = vpop.f32.mrf.mxu2 }
 0x267   :  { %938 = vsyncpa [#allocation3], 1 }

</bundles_post_ra>
